<compile_context>
chip_gen: v6e
topology: v6e:2x2x1
jax: 0.10.0
libtpu: 0.0.40
codegen_flags: <defaults>
</compile_context>

<pallas_src>
import jax
import jax.numpy as jnp
from jax import lax
from jax.experimental import pallas as pl
from jax.experimental.pallas import tpu as pltpu

# --- model config (mirrors the fields SelfMHA.__init__ reads) ---
HIDDEN = 32                       # model_config.hidden_size
HEADS = 4                         # model_config.heads
HEADS_KV = 4                      # model_config.heads_kv (== heads -> no GQA)
DIM_PER_HEAD = HIDDEN // HEADS    # model_config.dim_per_head = 8
BATCH = 2
SEQ = 8


def self_mha_kernel(x_ref, wqkv_ref, wo_ref, mask_ref, out_ref):
    """One grid step = one batch element, all heads.

    x_ref    : (1, S, H)  bf16 activations
    wqkv_ref : (H, 3H)    bf16 fused [Wq^T * scale | Wk^T | Wv^T]
    wo_ref   : (H, H)     bf16 Wo^T
    mask_ref : (1, S, S)  f32, >0 = attend
    out_ref  : (1, S, H)  f32
    """
    x = x_ref[0]                                                # (S, H) bf16

    # One fused QKV projection on the MXU (bf16 operands, f32 accumulation).
    qkv = jnp.dot(x, wqkv_ref[...],
                  preferred_element_type=jnp.float32)           # (S, 3H) f32
    qkv_b = qkv.astype(jnp.bfloat16)

    # Head-batched layout: (HEADS, S, D). Scale is already folded into Wq.
    def heads_first(t):
        return t.reshape(SEQ, HEADS, DIM_PER_HEAD).transpose(1, 0, 2)

    q = heads_first(qkv_b[:, 0 * HIDDEN:1 * HIDDEN])
    k = heads_first(qkv_b[:, 1 * HIDDEN:2 * HIDDEN])
    v = heads_first(qkv_b[:, 2 * HIDDEN:3 * HIDDEN])

    # Scores for all heads in one batched matmul: (HEADS, S, S), f32 acc.
    scores = lax.dot_general(
        q, k,
        dimension_numbers=(((2,), (2,)), ((0,), (0,))),
        preferred_element_type=jnp.float32)

    # masked_fill(~mask, finfo(f32).min) — jnp.where, not an additive bias,
    # so fully-masked rows behave exactly like the torch reference (uniform
    # softmax, no NaN).
    attend = mask_ref[0] > 0.5                                  # (S, S) bool
    neg = jnp.finfo(jnp.float32).min
    scores = jnp.where(attend[None, :, :], scores, neg)

    # softmax in float32 (matches F.softmax(..., dtype=torch.float32)).
    m = jnp.max(scores, axis=-1, keepdims=True)
    p = jnp.exp(scores - m)
    denom = jnp.sum(p, axis=-1, keepdims=True)
    attn = p * pl.reciprocal(denom, approx=True)

    # Context for all heads in one batched matmul: (HEADS, S, D).
    ctx = lax.dot_general(
        attn.astype(jnp.bfloat16), v,
        dimension_numbers=(((2,), (1,)), ((0,), (0,))),
        preferred_element_type=jnp.float32)

    # unshape: (S, HEADS*D) == (S, H)
    context = ctx.transpose(1, 0, 2).reshape(SEQ, HIDDEN).astype(jnp.bfloat16)

    # final_linear
    out = jnp.dot(context, wo_ref[...], preferred_element_type=jnp.float32)
    out_ref[0] = out.astype(out_ref.dtype)


def self_mha(x, wq, wk, wv, wo, mask):
    """x: (B, S, H) f32.
    wq/wk/wv/wo: torch nn.Linear layout (out_features, in_features).
    mask: (B, S, S) float32 (or bool), nonzero/True = attend.
    Returns (B, S, H) f32."""
    B, S, H = x.shape
    scale = DIM_PER_HEAD ** -0.5

    # Fused QKV weight, pre-transposed to (in, out), softmax scale folded into
    # the Wq columns: q = x @ (Wq^T * scale).
    wqkv = jnp.concatenate([wq.T * scale, wk.T, wv.T],
                           axis=1).astype(jnp.bfloat16)          # (H, 3H)
    wo_t = wo.T.astype(jnp.bfloat16)                             # (H, H)
    x_b = x.astype(jnp.bfloat16)
    mask_f = mask.astype(jnp.float32)                            # (B, S, S)

    out = pl.pallas_call(
        self_mha_kernel,
        out_shape=jax.ShapeDtypeStruct((B, S, H), jnp.float32),
        grid_spec=pltpu.PrefetchScalarGridSpec(
            num_scalar_prefetch=0,
            grid=(B,),
            in_specs=[
                pl.BlockSpec((1, S, H), lambda b: (b, 0, 0)),    # x (per batch)
                pl.BlockSpec((H, 3 * H), lambda b: (0, 0)),      # wqkv (resident)
                pl.BlockSpec((H, H), lambda b: (0, 0)),          # wo   (resident)
                pl.BlockSpec((1, S, S), lambda b: (b, 0, 0)),    # mask (per batch)
            ],
            out_specs=pl.BlockSpec((1, S, H), lambda b: (b, 0, 0)),
        ),
        compiler_params=pltpu.CompilerParams(
            dimension_semantics=("parallel",)),
    )(x_b, wqkv, wo_t, mask_f)
    return out


def reference_self_mha(x, wq, wk, wv, wo, mask_bool):
    """Pure-JAX f32 reference mirroring the PyTorch module (weights in torch
    (out, in) layout; mask_bool (B, 1, S, S), True = attend)."""
    B, S, H = x.shape
    D = DIM_PER_HEAD

    def shape_heads(t):
        return t.reshape(B, S, HEADS, D).transpose(0, 2, 1, 3)   # (B, h, S, D)

    q = shape_heads(x @ wq.T)
    k = shape_heads(x @ wk.T)
    v = shape_heads(x @ wv.T)

    scale = D ** -0.5
    scores = jnp.einsum("bhqd,bhkd->bhqk", q, k).astype(jnp.float32) * scale
    scores = jnp.where(mask_bool, scores, jnp.finfo(jnp.float32).min)
    attn = jax.nn.softmax(scores, axis=-1)
    ctx = jnp.einsum("bhqk,bhkd->bhqd", attn, v)
    ctx = ctx.transpose(0, 2, 1, 3).reshape(B, S, H)             # unshape
    return ctx @ wo.T


if __name__ == "__main__":
    key = jax.random.PRNGKey(0)
    kx, kq, kk, kv, ko = jax.random.split(key, 5)

    x = jax.random.normal(kx, (BATCH, SEQ, HIDDEN), dtype=jnp.float32)

    # Deterministic "skip_init" replacement: PyTorch nn.Linear weight layout
    # is (out_features, in_features).
    wq = jax.random.normal(kq, (HIDDEN, HIDDEN), dtype=jnp.float32) * 0.1
    wk = jax.random.normal(kk, (HIDDEN, HIDDEN), dtype=jnp.float32) * 0.1
    wv = jax.random.normal(kv, (HIDDEN, HIDDEN), dtype=jnp.float32) * 0.1
    wo = jax.random.normal(ko, (HIDDEN, HIDDEN), dtype=jnp.float32) * 0.1

    # Causal decoder mask, True/1.0 = position may be attended.
    causal = jnp.tril(jnp.ones((SEQ, SEQ), dtype=jnp.bool_))
    mask_bool = jnp.broadcast_to(causal[None, None], (BATCH, 1, SEQ, SEQ))
    mask_f32 = mask_bool[:, 0].astype(jnp.float32)               # (B, S, S)

    out = self_mha(x, wq, wk, wv, wo, mask_f32)
    out = jax.block_until_ready(out)

    ref = reference_self_mha(x, wq, wk, wv, wo, mask_bool)
    assert out.shape == (BATCH, SEQ, HIDDEN)
    # Tolerance deliberately relaxed for bf16 MXU operands + approx reciprocal
    # (f32 reference; errors observed are ~1e-3 at these magnitudes).
    assert jnp.allclose(out, ref, rtol=2e-2, atol=2e-2), (
        f"max err {jnp.max(jnp.abs(out - ref))}")

    print("KERNEL_OK")
</pallas_src>

<mosaic_0001>
module attributes {stable_mosaic.version = 11 : i64} {
  func.func @self_mha_kernel(%arg0: i32, %arg1: memref<1x8x32xbf16, #tpu.memory_space<vmem>>, %arg2: memref<32x96xbf16, #tpu.memory_space<vmem>>, %arg3: memref<32x32xbf16, #tpu.memory_space<vmem>>, %arg4: memref<1x8x8xf32, #tpu.memory_space<vmem>>, %arg5: memref<1x8x32xf32, #tpu.memory_space<vmem>>) attributes {dimension_semantics = [#tpu.dimension_semantics<parallel>], iteration_bounds = array<i64: 2>, scalar_prefetch = 0 : i64, scratch_operands = 0 : i64, tpu.core_type = #tpu.core_type<tc>, window_params = [{transform_indices = @transform_0, window_bounds = array<i64: 1, 8, 32>}, {pipeline_mode = #tpu.pipeline_mode<synchronous>, transform_indices = @transform_1, window_bounds = array<i64: 32, 96>}, {pipeline_mode = #tpu.pipeline_mode<synchronous>, transform_indices = @transform_2, window_bounds = array<i64: 32, 32>}, {transform_indices = @transform_3, window_bounds = array<i64: 1, 8, 8>}, {transform_indices = @transform_4, window_bounds = array<i64: 1, 8, 32>}]} {
    %c0 = arith.constant 0 : index
    %c0_0 = arith.constant 0 : index
    %c0_1 = arith.constant 0 : index
    %0 = vector.load %arg1[%c0, %c0_0, %c0_1] : memref<1x8x32xbf16, #tpu.memory_space<vmem>>, vector<1x8x32xbf16>
    %1 = vector.shape_cast %0 : vector<1x8x32xbf16> to vector<8x32xbf16>
    %c0_2 = arith.constant 0 : index
    %c0_3 = arith.constant 0 : index
    %2 = vector.load %arg2[%c0_2, %c0_3] : memref<32x96xbf16, #tpu.memory_space<vmem>>, vector<32x96xbf16>
    %cst = arith.constant dense<0.000000e+00> : vector<8x96xf32>
    %3 = tpu.matmul %1, %2, %cst {dimension_numbers = #tpu.dot_dimension_numbers<[1], [0], [0], [1], [0, 0, 1, 1], [], []>} : vector<8x32xbf16>, vector<32x96xbf16>, vector<8x96xf32> -> vector<8x96xf32>
    %4 = arith.truncf %3 : vector<8x96xf32> to vector<8x96xbf16>
    %5 = vector.extract_strided_slice %4 {offsets = [0, 0], sizes = [8, 32], strides = [1, 1]} : vector<8x96xbf16> to vector<8x32xbf16>
    %6 = vector.shape_cast %5 : vector<8x32xbf16> to vector<8x4x8xbf16>
    %7 = tpu.transpose %6, [1, 0, 2] : vector<8x4x8xbf16> -> vector<4x8x8xbf16>
    %8 = vector.extract_strided_slice %4 {offsets = [0, 32], sizes = [8, 32], strides = [1, 1]} : vector<8x96xbf16> to vector<8x32xbf16>
    %9 = vector.shape_cast %8 : vector<8x32xbf16> to vector<8x4x8xbf16>
    %10 = tpu.transpose %9, [1, 0, 2] : vector<8x4x8xbf16> -> vector<4x8x8xbf16>
    %11 = vector.extract_strided_slice %4 {offsets = [0, 64], sizes = [8, 32], strides = [1, 1]} : vector<8x96xbf16> to vector<8x32xbf16>
    %12 = vector.shape_cast %11 : vector<8x32xbf16> to vector<8x4x8xbf16>
    %13 = tpu.transpose %12, [1, 0, 2] : vector<8x4x8xbf16> -> vector<4x8x8xbf16>
    %cst_4 = arith.constant dense<0.000000e+00> : vector<4x8x8xf32>
    %14 = tpu.matmul %7, %10, %cst_4 {dimension_numbers = #tpu.dot_dimension_numbers<[2], [2], [1], [1], [0, 0, 0, 1, 1, 1], [0], [0]>} : vector<4x8x8xbf16>, vector<4x8x8xbf16>, vector<4x8x8xf32> -> vector<4x8x8xf32>
    %c0_5 = arith.constant 0 : index
    %c0_6 = arith.constant 0 : index
    %c0_7 = arith.constant 0 : index
    %15 = vector.load %arg4[%c0_5, %c0_6, %c0_7] : memref<1x8x8xf32, #tpu.memory_space<vmem>>, vector<1x8x8xf32>
    %16 = vector.shape_cast %15 : vector<1x8x8xf32> to vector<8x8xf32>
    %cst_8 = arith.constant 5.000000e-01 : f32
    %17 = vector.broadcast %cst_8 : f32 to vector<8x8xf32>
    %18 = arith.cmpf ogt, %16, %17 : vector<8x8xf32>
    %19 = vector.shape_cast %18 : vector<8x8xi1> to vector<1x8x8xi1>
    %cst_9 = arith.constant -3.40282347E+38 : f32
    %20 = vector.shape_cast %19 : vector<1x8x8xi1> to vector<1x8x8xi1>
    %21 = vector.broadcast %20 : vector<1x8x8xi1> to vector<4x8x8xi1>
    %22 = vector.broadcast %cst_9 : f32 to vector<4x8x8xf32>
    %23 = arith.select %21, %14, %22 : vector<4x8x8xi1>, vector<4x8x8xf32>
    %cst_10 = arith.constant dense<0xFF800000> : vector<4x8xf32>
    %24 = vector.multi_reduction <maximumf>, %23, %cst_10 [2] : vector<4x8x8xf32> to vector<4x8xf32>
    %25 = vector.shape_cast %24 : vector<4x8xf32> to vector<4x8x1xf32>
    %26 = vector.broadcast %25 : vector<4x8x1xf32> to vector<4x8x8xf32>
    %27 = arith.subf %23, %26 : vector<4x8x8xf32>
    %28 = math.exp %27 : vector<4x8x8xf32>
    %cst_11 = arith.constant dense<0.000000e+00> : vector<4x8xf32>
    %29 = vector.multi_reduction <add>, %28, %cst_11 [2] : vector<4x8x8xf32> to vector<4x8xf32>
    %30 = vector.shape_cast %29 : vector<4x8xf32> to vector<4x8x1xf32>
    %31 = tpu.reciprocal %30 {approx = true} : vector<4x8x1xf32> -> vector<4x8x1xf32>
    %32 = vector.broadcast %31 : vector<4x8x1xf32> to vector<4x8x8xf32>
    %33 = arith.mulf %28, %32 : vector<4x8x8xf32>
    %34 = arith.truncf %33 : vector<4x8x8xf32> to vector<4x8x8xbf16>
    %cst_12 = arith.constant dense<0.000000e+00> : vector<4x8x8xf32>
    %35 = tpu.matmul %34, %13, %cst_12 {dimension_numbers = #tpu.dot_dimension_numbers<[2], [1], [1], [2], [0, 0, 0, 1, 1, 2], [0], [0]>} : vector<4x8x8xbf16>, vector<4x8x8xbf16>, vector<4x8x8xf32> -> vector<4x8x8xf32>
    %36 = tpu.transpose %35, [1, 0, 2] : vector<4x8x8xf32> -> vector<8x4x8xf32>
    %37 = vector.shape_cast %36 : vector<8x4x8xf32> to vector<8x32xf32>
    %38 = arith.truncf %37 : vector<8x32xf32> to vector<8x32xbf16>
    %c0_13 = arith.constant 0 : index
    %c0_14 = arith.constant 0 : index
    %39 = vector.load %arg3[%c0_13, %c0_14] : memref<32x32xbf16, #tpu.memory_space<vmem>>, vector<32x32xbf16>
    %cst_15 = arith.constant dense<0.000000e+00> : vector<8x32xf32>
    %40 = tpu.matmul %38, %39, %cst_15 {dimension_numbers = #tpu.dot_dimension_numbers<[1], [0], [0], [1], [0, 0, 1, 1], [], []>} : vector<8x32xbf16>, vector<32x32xbf16>, vector<8x32xf32> -> vector<8x32xf32>
    %c0_16 = arith.constant 0 : index
    %c0_17 = arith.constant 0 : index
    %c0_18 = arith.constant 0 : index
    %41 = vector.load %arg5[%c0_16, %c0_17, %c0_18] : memref<1x8x32xf32, #tpu.memory_space<vmem>>, vector<1x8x32xf32>
    %42 = vector.shape_cast %41 : vector<1x8x32xf32> to vector<8x32xf32>
    %43 = vector.shape_cast %40 : vector<8x32xf32> to vector<1x8x32xf32>
    tpu.vector_store %arg5[%c0_16, %c0_17, %c0_18], %43 {strides = array<i32>} : memref<1x8x32xf32, #tpu.memory_space<vmem>>, vector<1x8x32xf32>,
    return
  }
  func.func @transform_0(%arg0: i32) -> (i32, i32, i32) {
    %c0_i32 = arith.constant 0 : i32
    %c0_i32_0 = arith.constant 0 : i32
    %c0_i32_1 = arith.constant 0 : i32
    return %arg0, %c0_i32, %c0_i32_0 : i32, i32, i32
  }
  func.func @transform_1(%arg0: i32) -> (i32, i32) {
    %c0_i32 = arith.constant 0 : i32
    %c0_i32_0 = arith.constant 0 : i32
    %c0_i32_1 = arith.constant 0 : i32
    return %c0_i32, %c0_i32_0 : i32, i32
  }
  func.func @transform_2(%arg0: i32) -> (i32, i32) {
    %c0_i32 = arith.constant 0 : i32
    %c0_i32_0 = arith.constant 0 : i32
    %c0_i32_1 = arith.constant 0 : i32
    return %c0_i32, %c0_i32_0 : i32, i32
  }
  func.func @transform_3(%arg0: i32) -> (i32, i32, i32) {
    %c0_i32 = arith.constant 0 : i32
    %c0_i32_0 = arith.constant 0 : i32
    %c0_i32_1 = arith.constant 0 : i32
    return %arg0, %c0_i32, %c0_i32_0 : i32, i32, i32
  }
  func.func @transform_4(%arg0: i32) -> (i32, i32, i32) {
    %c0_i32 = arith.constant 0 : i32
    %c0_i32_0 = arith.constant 0 : i32
    %c0_i32_1 = arith.constant 0 : i32
    return %arg0, %c0_i32, %c0_i32_0 : i32, i32, i32
  }
}

</mosaic_0001>

<bundles_post_ra>
// kernel: tpu_custom_call.1
= control target key start
LH: loop header
LB: loop body
LE: loop exit
PB: predicated region body
PF: predicated region fallthrough
CT: control target
= control target key end

     0   :  { %s2500_s0 = inlined_call_operand.hbm [shape: bf16[2,8,32], index: 0, kind: input, shape index: {}]   ;;  %s2501_s1 = inlined_call_operand.hbm [shape: bf16[32,96], index: 1, kind: input, shape index: {}]   ;;  %s2502_s2 = inlined_call_operand.hbm [shape: bf16[32,32], index: 2, kind: input, shape index: {}]   ;;  %s2503_s3 = inlined_call_operand.hbm [shape: f32[2,8,8], index: 3, kind: input, shape index: {}]   ;;  %s2504_s4 = inlined_call_operand.hbm [shape: f32[2,8,32], index: 4, kind: output, shape index: {}]  }
   0x1   :  { %2509 = sst [smem:[#allocation15_spill]] %s2500_s0 }
   0x2   :  { %2510 = sst [smem:[#allocation16_spill]] %s2501_s1 }
   0x3   :  { %9 = vsyncpa [#allocation3], 0 }
   0x4   :  { %11 = vsyncpa [#allocation3 + $0x1], 0 }
   0x5   :  { %12 = vsyncpa [#allocation6], 0 }
   0x6   :  { %13 = vsyncpa [#allocation9], 0 }
   0x7   :  { %15 = vsyncpa [#allocation9 + $0x1], 0 }
   0x8   :  { %16 = vsyncpa [#allocation4], 0 }
   0x9   :  { %18 = vsyncpa [#allocation4 + $0x1], 0  ;;  %s2071_s15 = smov 0   ;;  %s2073_s16 = smov 0  }
   0xa   :  { %s2075_s17 = smov 0   ;;  %s2077_s18 = smov 0  }
   0xb LB: > { %s2092_s19 = sadd.s32 4294967295, %s2024_s18   ;;  %s1616_s20 = sadd.s32 4294967294, %s2024_s18   ;;  %s2024_s18 = sphi %s2077_s18, %s2530_s18   ;;  %s2020_s17 = sphi %s2075_s17, %s2529_s17   ;;  %s2016_s16 = sphi %s2073_s16, %s2528_s16   ;;  %s2012_s15 = sphi %s2071_s15, %s2527_s15  }
   0xc   : > { %p44_p0 = scmp.ne.s32.totalorder %s2016_s16, %s2012_s15  ;;  %p2505_p1 = scmp.eq.s32.totalorder %s2092_s19, 0 }
   0xd   : > { %p142_p3 = scmp.eq.s32.totalorder %s1616_s20, 1  ;;  %p1617_p5 = scmp.ge.s32.totalorder %s2024_s18, 1 }
   0xe   : > { %p2101_p4 = por %p2505_p1, %p44_p0  ;;  %p149_p7 = scmp.lt.s32.totalorder %s2024_s18, 3 }
   0xf   : > { %p2106_p6 = por %p142_p3, %p44_p0  ;;  %s2026_s24 = smov [#allocation5]  }
  0x10   : > { %s2511_s21 = scalar_select %p2101_p4, 1, 0 }
  0x11   : > { %s2512_s22 = scalar_select %p2106_p6, 1, 0 }
  0x12   : > { %p2111_p8 = pnand %p1617_p5, %p149_p7  ;;  %s161_s25 = sshll.u32 %s2026_s24, 4  ;;  %s162_s25 = int_to_ptr.vmem [resolvable:$true] %s161_s25 }
  0x13   : > { %s2027_s27 = smov [#allocation7]   ;;  %s1855_s29 = scalar_lea.vmem %s162_s25, 256 }
  0x14   : > { %s2513_s23 = scalar_select %p2111_p8, 1, 0 }
  0x15   : > { %p1751_p9 = pneg %p2111_p8  ;;  %s174_s28 = sshll.u32 %s2027_s27, 4  ;;  %s175_s28 = int_to_ptr.vmem [resolvable:$true] %s174_s28 }
  0x16   : > { %p1856_p13 = scmp.ne.s32.totalorder %s162_s25, %s1855_s29  ;;  %p1863_p5 = scmp.lt.s32.totalorder %s162_s25, %s162_s25 }
  0x17   : > { %p2120_p11 = pnand %p1751_p9, %p2505_p1  ;;  %p1864_p7 = scmp.lt.s32.totalorder %s1855_s29, %s1855_s29 }
  0x19   : > { %p1846_p12 = pneg %p2120_p11  ;;  %p1865_p10 = por %p1864_p7, %p1863_p5 }
  0x1b   : > { %p1858_p0 = pnand %p1856_p13, %p1846_p12 }
  0x1d   : > { %p1859_p3 = pneg %p1858_p0 }
  0x1f   : > { %p1866_p9 = pnand %p1865_p10, %p1859_p3 }
  0x21   : > { %1869 = shalt.err (!%p1866_p9)
}
  0x22   : > { %s2028_s30 = smov 64   ;;  %s2029_s5 = smov 4  }
  0x23   : > { %s2515_s1 = sld [smem:[#allocation16_spill]]  ;;  %s1881_s8 = scalar_lea.vmem %s175_s28, 256 }
  0x24   : > { %p1882_p1 = scmp.ne.s32.totalorder %s175_s28, %s1881_s8  ;;  %p1889_p2 = scmp.lt.s32.totalorder %s175_s28, %s175_s28 }
  0x25   : > { %p1890_p6 = scmp.lt.s32.totalorder %s1881_s8, %s1881_s8 }
  0x26   : > { %p1884_p13 = pnand %p1882_p1, %p1846_p12 }
  0x27   : > { %p1891_p5 = por %p1890_p6, %p1889_p2 }
  0x28   : > { %p1885_p0 = pneg %p1884_p13 }
  0x29   : > { %1754 = dma.hbm_to_vmem [thread:$0]  (!%p2120_p11), %s2515_s1, 256, %s162_s25, [#allocation6], %s2028_s30, %s2028_s30, %s2029_s5  }
  0x2a   : > { %p1892_p10 = pnand %p1891_p5, %p1885_p0 }
  0x2c   : > { %1895 = shalt.err (!%p1892_p10)
}
  0x2d   : > { %1757 = dma.hbm_to_vmem [thread:$0]  (!%p2120_p11), %s2502_s2, 256, %s175_s28, [#allocation6], %s2028_s30, %s2028_s30, %s2029_s5  }
  0x2e   : > { %s2143_s11 = sadd.s32 1, %s2024_s18   ;;  %s31_s12 = sadd.s32 1, %s2020_s17 }
  0x2f   : > { %s28_s13 = ssub.s32 %s2024_s18, %s2143_s11  ;;  %p38_p1 = scmp.ne.s32.totalorder %s2020_s17, %s2016_s16 }
  0x30   : > { %p29_p2 = scmp.eq.s32.totalorder %s28_s13, 0  ;;  %p39_p6 = scmp.eq.s32.totalorder %s2024_s18, 0 }
  0x31   : > { %p2516_p12 = scmp.eq.s32.totalorder %s2092_s19, 1  ;;  %p1771_p7 = scmp.lt.s32.totalorder %s2024_s18, 2 }
  0x32   : > { %s2159_s20 = scalar_select %p29_p2, %s2020_s17, %s31_s12  }
  0x33   : > { %p2153_p3 = por %p2516_p12, %p38_p1  ;;  %p40_p9 = por %p39_p6, %p38_p1 }
  0x34   : > { %s2162_s24 = sand.u32 1, %s2020_s17   ;;  %s1622_s26 = sshll.u32 %s2024_s18, 6 }
  0x35   : > { %s2517_s14 = scalar_select %p2153_p3, 1, 0 }
  0x36   : > { %s1621_s25 = sshll.u32 %s2162_s24, 2  ;;  %s2518_s0 = sld [smem:[#allocation15_spill]] }
  0x37   : > { %s192_s30 = scalar_lea.vmem [#allocation2], %s1621_s25  ;;  %p2173_p11 = pnand %p1771_p7, %p40_p9 }
  0x38   : > { %s199_s5 = sshll.u32 %s192_s30, 4  ;;  %s1623_s7 = sshll.u32 %s2162_s24, 3  ;;  %s2171_s5 = int_to_ptr.vmem [resolvable:$true] %s199_s5 }
  0x39   : > { %s189_s8 = scalar_lea.sflag [#allocation3], %s2162_s24  ;;  %p1898_p0 = pneg %p2173_p11 }
  0x3c   : > { %s2169_s29 = scalar_lea.hbm %s2518_s0, %s1622_s26  ;;  %s1901_s13 = scalar_lea.hbm %s2518_s0, 128 }
  0x3d   : > { %s1896_s9 = scalar_lea.hbm %s2169_s29, 64  ;;  %p1902_p1 = scmp.lt.s32.totalorder %s2169_s29, %s2518_s0 }
  0x3e   : > { %p1897_p13 = scmp.ne.s32.totalorder %s2169_s29, %s1896_s9  ;;  %p1903_p2 = scmp.lt.s32.totalorder %s1901_s13, %s1896_s9 }
  0x40   : > { %p1899_p5 = pnand %p1898_p0, %p1897_p13  ;;  %p1904_p6 = por %p1903_p2, %p1902_p1 }
  0x42   : > { %p1900_p10 = pneg %p1899_p5 }
  0x44   : > { %p1905_p12 = pnand %p1904_p6, %p1900_p10 }
  0x46   : > { %1908 = shalt.err (!%p1905_p12)
}
  0x47   : > { %s1909_s27 = scalar_lea.vmem %s2171_s5, 64  ;;  %s2030_s28 = smov [#allocation2]  }
  0x48   : > { %p1910_p7 = scmp.ne.s32.totalorder %s2171_s5, %s1909_s27  ;;  %s1914_s30 = sshll.u32 %s2030_s28, 4  ;;  %s1915_s30 = int_to_ptr.vmem [resolvable:$false] %s1914_s30 }
  0x49   : > { %s1916_s10 = scalar_lea.vmem %s1915_s30, 128  ;;  %p1917_p5 = scmp.lt.s32.totalorder %s2171_s5, %s1915_s30 }
  0x4a   : > { %p1912_p9 = pnand %p1910_p7, %p1898_p0  ;;  %p1918_p3 = scmp.lt.s32.totalorder %s1916_s10, %s1909_s27 }
  0x4c   : > { %p1913_p13 = pneg %p1912_p9  ;;  %p1919_p4 = por %p1918_p3, %p1917_p5 }
  0x4e   : > { %p1920_p1 = pnand %p1919_p4, %p1913_p13 }
  0x50   : > { %1923 = shalt.err (!%p1920_p1)
}
  0x51   : > { %1761 = dma.hbm_to_vmem [thread:$0]  (!%p2173_p11), %s2169_s29, 64, %s2171_s5, %s189_s8  }
  0x52   : > { %s1624_s9 = sshll.u32 %s2024_s18, 7  ;;  %s210_s12 = scalar_lea.vmem [#allocation8], %s1623_s7 }
  0x53   : > { %s217_s13 = sshll.u32 %s210_s12, 4  ;;  %s215_s28 = scalar_lea.hbm %s2503_s3, %s1624_s9  ;;  %s218_s13 = int_to_ptr.vmem [resolvable:$true] %s217_s13 }
  0x54   : > { %s207_s27 = scalar_lea.sflag [#allocation9], %s2162_s24  ;;  %s1924_s30 = scalar_lea.hbm %s215_s28, 128 }
  0x55   : > { %p1925_p4 = scmp.ne.s32.totalorder %s215_s28, %s1924_s30  ;;  %s1929_s1 = scalar_lea.hbm %s2503_s3, 256 }
  0x56   : > { %p1930_p2 = scmp.lt.s32.totalorder %s215_s28, %s2503_s3  ;;  %p1931_p6 = scmp.lt.s32.totalorder %s1929_s1, %s1924_s30 }
  0x57   : > { %p1927_p3 = pnand %p1925_p4, %p1898_p0 }
  0x58   : > { %p1932_p12 = por %p1931_p6, %p1930_p2 }
  0x59   : > { %p1928_p10 = pneg %p1927_p3 }
  0x5b   : > { %p1933_p7 = pnand %p1932_p12, %p1928_p10 }
  0x5d   : > { %1936 = shalt.err (!%p1933_p7)
}
  0x5e   : > { %s1937_s7 = scalar_lea.vmem %s218_s13, 128  ;;  %s2031_s24 = smov [#allocation8]  }
  0x5f   : > { %p1938_p9 = scmp.ne.s32.totalorder %s218_s13, %s1937_s7  ;;  %s1942_s8 = sshll.u32 %s2031_s24, 4  ;;  %s1943_s8 = int_to_ptr.vmem [resolvable:$false] %s1942_s8 }
  0x60   : > { %s1944_s0 = scalar_lea.vmem %s1943_s8, 256  ;;  %p1945_p1 = scmp.lt.s32.totalorder %s218_s13, %s1943_s8 }
  0x61   : > { %p1940_p13 = pnand %p1938_p9, %p1898_p0  ;;  %p1946_p4 = scmp.lt.s32.totalorder %s1944_s0, %s1937_s7 }
  0x63   : > { %p1941_p5 = pneg %p1940_p13  ;;  %p1947_p3 = por %p1946_p4, %p1945_p1 }
  0x65   : > { %p1948_p8 = pnand %p1947_p3, %p1941_p5 }
  0x67   : > { %1951 = shalt.err (!%p1948_p8)
}
  0x68   : > { %1764 = dma.hbm_to_vmem [thread:$0]  (!%p2173_p11), %s215_s28, 128, %s218_s13, %s207_s27  }
  0x69   : > { %p2520_p10 = scmp.ne.s32.totalorder %s2513_s23, 0 }
  0x6a   : > { %s2225_s1 = sand.u32 (!%p2520_p10), 1, %s2016_s16   ;;  %p2521_p0 = scmp.ne.s32.totalorder (!%p2520_p10), %s2511_s21, 0 }
  0x6b   : > { %226 = sbr.rel (%p2520_p10) target bundleno = 1694 (0x69e), region = 36  ;;  %s1626_s9 = sshll.u32 (!%p2520_p10), %s2225_s1, 2 }
  0x6c   : > { %s229_s12 = scalar_lea.sflag (!%p2520_p10), [#allocation3], %s2225_s1  ;;  %s232_s25 = scalar_lea.vmem (!%p2520_p10), [#allocation2], %s1626_s9 }
  0x70   : > { %1995 = dma.done.wait (%p2521_p0), %s229_s12, 64  }
  0x71   : > { %1997 = vsyncadd (%p2521_p0), %s229_s12, 4294967232  ;;  %p2522_p8 = scmp.eq.s32.totalorder %s2092_s19, 0 }
  0x73   : > { %1999 = dma.done.wait (%p2522_p8), [#allocation6], 512   ;;  %p2523_p11 = pmov %p2522_p8 }
  0x74   : > { %s1629_s23 = sshll.u32 %s2225_s1, 3  ;;  %s246_s6 = scalar_lea.sflag [#allocation9], %s2225_s1 }
  0x75   : > { %2001 = vsyncadd (%p2523_p11), [#allocation6], 4294966784  ;;  %s2241_s13 = scalar_lea.vmem [#allocation8], %s1629_s23 }
  0x76   : > { %2003 = dma.done.wait (%p2521_p0), %s246_s6, 128  }
  0x77   : > { %2005 = vsyncadd (%p2521_p0), %s246_s6, 4294967168  ;;  %v2032_v0 = vmov 0.0   ;;  %vm2033_vm0 = vmmov 0   ;;  %v1824_v1 = vld [vmem:[#allocation5 + $0x8] sm:$0xff]   ;;  %v1825_v2 = vld [vmem:[#allocation5] sm:$0xff]   ;;  %vm297_vm1 = vcmask 261120   ;;  %v352_v14 = vlaneseq }
  0x78   : > { %1673 = vmatprep.subr.bf16.mxu0 %v2032_v0  ;;  %1677 = vmatprep.mubr.msk.bf16.mxu0 %vm2033_vm0, %v2032_v0  ;;  %v280_v3 = vld [vmem:[%s232_s25] sm:$0xf]  ;;  %s2034_s21 = smov 104   ;;  %s2035_s26 = smov 120   ;;  %v2038_v12 = vmov 1983009808  }
  0x79   : > { %1681 = vmatprep.subr.bf16.mxu1 %v2032_v0  ;;  %1683 = vmatprep.mubr.msk.bf16.mxu1 %vm2033_vm0, %v2032_v0  ;;  %s2036_s28 = smov 96   ;;  %s2037_s27 = smov 112   ;;  %v350_v13 = vunpack.c.l.s4 %v2038_v12  ;;  %v353_v16 = vshrl.u32 %v352_v14, 7  ;;  %v2039_v17 = vmov 1934713408   ;;  %v2040_v36 = vmov 0  }
  0x7a   : > { %1674 = vmatpush3.bf16.msra.mxu0 %v1824_v1  ;;  %v367_v18 = vunpack.c.l.s4 %v2039_v17  ;;  %vm850_vm2 = vcmask 64512   ;;  %s2041_s30 = smov 64   ;;  %vm1094_vm4 = vcmask 1043456   ;;  %s2042_s10 = smov 16   ;;  %vm1425_vm5 = vcmask 130048  }
  0x7b   : > { %1675 = vmatprep.subr.bf16.mxu0 %v2032_v0  ;;  %v351_v15 = vunpack.c.0.s8 %v350_v13  ;;  %s2043_s29 = smov 8   ;;  %s2044_s5 = smov 24   ;;  %vm1427_vm6 = vcmask 195584  }
  0x7c   : > { %v368_v21 = vunpack.c.0.s8 %v367_v18  ;;  %s1648_s7 = sshll.u32 %s2092_s19, 7  ;;  %s278_s24 = scalar_lea.vmem [#allocation10], %s1629_s23 }
  0x7d   : > { %v2273_v19 = vsub.s32 %v351_v15, %v353_v16  ;;  %s1504_s8 = sshll.u32 %s278_s24, 4  ;;  %s2456_s12 = scalar_lea.hbm %s2504_s4, %s1648_s7  ;;  %s2458_s8 = int_to_ptr.vmem [resolvable:$true] %s1504_s8 }
  0x7e   : > { %1676 = vmatpush3.bf16.msra.mxu0 %v1825_v2  ;;  %v2283_v25 = vsub.s32 %v368_v21, %v353_v16  ;;  %s1491_s25 = scalar_lea.sflag [#allocation4], %s2225_s1  ;;  %s1952_s6 = scalar_lea.vmem %s2458_s8, 128 }
  0x7f   : > { %1687 = vmatprep.subr.bf16.mxu0 %v2032_v0  ;;  %p1953_p2 = scmp.ne.s32.totalorder %s2458_s8, %s1952_s6  ;;  %p2524_p6 = scmp.ne.s32.totalorder %s2517_s14, 0 }
  0x80   : > { %s2045_s19 = smov [#allocation10]  }
  0x81   : > { %1678 = vmatmul.mubr.msk.bf16.vlgmr.msra.gmra.mxu0 %vm297_vm1, %v280_v3  ;;  %p1954_p12 = pnand %p1953_p2, %p2524_p6  ;;  %s1956_s23 = sshll.u32 %s2045_s19, 4  ;;  %s1957_s23 = int_to_ptr.vmem [resolvable:$false] %s1956_s23 }
  0x82   : > { %1689 = vmatprep.mubr.msk.bf16.mxu0 %vm2033_vm0, %v2032_v0  ;;  %p1959_p9 = scmp.lt.s32.totalorder %s2458_s8, %s1957_s23 }
  0x83   : > { %p1955_p7 = pneg %p1954_p12 }
 0x141   : > { %v335_v4 = vpop.f32.mrf.mxu0 }
 0x142   : > { %v2258_v5 = vpack.c.bf16 %v335_v4, %v335_v4 }
 0x143   : > { %v1679_v6 = vpop.f32.mrf.mxu0 }
 0x144   : > { %347 = vrot.lane.b32.xlu1 %v2258_v5, %s2034_s21  ;;  %343 = vrot.lane.b32.xlu0 %v2258_v5, %s2035_s26  ;;  %v355_v24 = vrot.slane %v2258_v5, %v2273_v19 }
 0x145   : > { %v338_v7 = vpop.f32.mrf.mxu0 }
 0x147   : > { %v1680_v8 = vpop.f32.mrf.mxu0 }
 0x148   : > { %510 = vrot.lane.b32.xlu1 %v2258_v5, %s2036_s28  ;;  %345 = vrot.lane.b32.xlu0 %v2258_v5, %s2037_s27 }
 0x1b6   : > { %v2264_v9 = vpop.permute.xlu0 %343  ;;  %v2267_v10 = vpop.permute.xlu1 %347 }
 0x1b7   : > { %512 = vrot.lane.b32.xlu0 %v2264_v9, %s2036_s28  ;;  %v397_v20 = vrot.slane %v2267_v10, %v2273_v19  ;;  %v389_v22 = vrot.slane %v2264_v9, %v2273_v19 }
 0x1b9   : > { %v398_v26 = vcombine.low %v389_v22, %v397_v20  ;;  %v399_v29 = vcombine.high %v389_v22, %v397_v20 }
 0x1ba   : > { %v2269_v11 = vpop.permute.xlu0 %345  ;;  %v511_v35 = vpop.permute.xlu1 %510 }
 0x1bb   : > { %516 = vrot.lane.b32.xlu0 %v2267_v10, %s2036_s28  ;;  %514 = vrot.lane.b32.xlu1 %v2269_v11, %s2036_s28  ;;  %v363_v23 = vrot.slane %v2269_v11, %v2273_v19  ;;  %v2286_v30 = vrot.slane %v398_v26, %v2283_v25  ;;  %v2295_v33 = vrot.slane %v399_v29, %v2283_v25 }
 0x1bc   : > { %v525_v42 = vrot.slane %v511_v35, %v2273_v19 }
 0x1bd   : > { %v364_v27 = vcombine.low %v355_v24, %v363_v23  ;;  %v365_v28 = vcombine.high %v355_v24, %v363_v23  ;;  %v414_v37 = vcombine.high %v2286_v30, %v2040_v36  ;;  %v415_v40 = vcombine.high %v2295_v33, %v2040_v36 }
 0x1be   : > { %v421_v41 = vshrl.u32 %v2286_v30, 16  ;;  %v437_v45 = vshrl.u32 %v2295_v33, 16 }
 0x1bf   : > { %v2289_v31 = vrot.slane %v364_v27, %v2283_v25  ;;  %v2292_v32 = vrot.slane %v365_v28, %v2283_v25  ;;  %v429_v50 = vshrl.u32 %v414_v37, 16  ;;  %v445_v54 = vshrl.u32 %v415_v40, 16 }
 0x1c1   : > { %v380_v38 = vcombine.high %v2289_v31, %v2040_v36  ;;  %v381_v39 = vcombine.high %v2292_v32, %v2040_v36  ;;  %v420_v43 = vshrl.u32 %v2289_v31, 16  ;;  %v436_v46 = vshrl.u32 %v2292_v32, 16 }
 0x1c2   : > { %v418_v55 = vpack.i.b16 %v2286_v30, %v2289_v31  ;;  %v434_v29 = vpack.i.b16 %v2295_v33, %v2292_v32 }
 0x1c3   : > { %v428_v51 = vshrl.u32 %v380_v38, 16  ;;  %v444_v52 = vshrl.u32 %v381_v39, 16  ;;  %v422_v58 = vpack.i.b16 %v421_v41, %v420_v43  ;;  %v426_v59 = vpack.i.b16 %v414_v37, %v380_v38 }
 0x1c4   : > { %v438_v62 = vpack.i.b16 %v437_v45, %v436_v46  ;;  %v442_v63 = vpack.i.b16 %v415_v40, %v381_v39 }
 0x1c5   : > { %v430_v3 = vpack.i.b16 %v429_v50, %v428_v51  ;;  %v446_v4 = vpack.i.b16 %v445_v54, %v444_v52 }
 0x1c6   : > { %v456_v39 = vcombine.low %v426_v59, %v442_v63 }
 0x1c7   : > { %v481_v38 = vcombine.low %v430_v3, %v446_v4 }
 0x1c9   : > { %v488_v33 = vrot.slane %v481_v38, %v2273_v19 }
 0x229   : > { %v513_v34 = vpop.permute.xlu0 %512 }
 0x22a   : > { %v559_v47 = vrot.slane %v513_v34, %v2273_v19 }
 0x22d   : > { %v517_v44 = vpop.permute.xlu0 %516  ;;  %v515_v48 = vpop.permute.xlu1 %514 }
 0x22e   : > { %v567_v49 = vrot.slane %v517_v44, %v2273_v19  ;;  %v533_v53 = vrot.slane %v515_v48, %v2273_v19  ;;  %v448_v44 = vcombine.low %v418_v55, %v434_v29 }
 0x230   : > { %v568_v56 = vcombine.low %v559_v47, %v567_v49  ;;  %v569_v57 = vcombine.high %v559_v47, %v567_v49  ;;  %v534_v60 = vcombine.low %v525_v42, %v533_v53  ;;  %v535_v61 = vcombine.high %v525_v42, %v533_v53 }
 0x231   : > { %v473_v42 = vcombine.low %v422_v58, %v438_v62  ;;  %v463_v49 = vrot.slane %v456_v39, %v2273_v19  ;;  %v455_v53 = vrot.slane %v448_v44, %v2273_v19 }
 0x232   : > { %v576_v1 = vrot.slane %v568_v56, %v2283_v25  ;;  %v583_v2 = vrot.slane %v569_v57, %v2283_v25  ;;  %v542_v6 = vrot.slane %v534_v60, %v2283_v25  ;;  %v549_v7 = vrot.slane %v535_v61, %v2283_v25 }
 0x233   : > { %v480_v51 = vrot.slane %v473_v42, %v2273_v19  ;;  %v464_v56 = vcombine.low %v455_v53, %v463_v49 }
 0x234   : > { %v584_v8 = vcombine.high %v576_v1, %v2040_v36  ;;  %v585_v12 = vcombine.high %v583_v2, %v2040_v36  ;;  %v591_v13 = vshrl.u32 %v576_v1, 16  ;;  %v607_v14 = vshrl.u32 %v583_v2, 16 }
 0x235   : > { %v550_v15 = vcombine.high %v542_v6, %v2040_v36  ;;  %v551_v16 = vcombine.high %v549_v7, %v2040_v36  ;;  %v590_v17 = vshrl.u32 %v542_v6, 16  ;;  %v606_v18 = vshrl.u32 %v549_v7, 16 }
 0x236   : > { %v588_v20 = vpack.i.b16 %v576_v1, %v542_v6  ;;  %v599_v21 = vshrl.u32 %v584_v8, 16  ;;  %v604_v22 = vpack.i.b16 %v583_v2, %v549_v7  ;;  %v615_v23 = vshrl.u32 %v585_v12, 16 }
 0x237   : > { %v598_v24 = vshrl.u32 %v550_v15, 16  ;;  %v614_v26 = vshrl.u32 %v551_v16, 16  ;;  %v592_v27 = vpack.i.b16 %v591_v13, %v590_v17  ;;  %v596_v28 = vpack.i.b16 %v584_v8, %v550_v15 }
 0x238   : > { %v608_v30 = vpack.i.b16 %v607_v14, %v606_v18  ;;  %v612_v31 = vpack.i.b16 %v585_v12, %v551_v16  ;;  %v618_v34 = vcombine.low %v588_v20, %v604_v22  ;;  %v489_v55 = vcombine.low %v480_v51, %v488_v33 }
 0x239   : > { %v600_v35 = vpack.i.b16 %v599_v21, %v598_v24  ;;  %v616_v37 = vpack.i.b16 %v615_v23, %v614_v26  ;;  %v471_v3 = vrot.slane %v464_v56, %v2283_v25  ;;  %v1035_v26 = vld [vmem:[%s2241_s13] sm:$0xff]  ;;  %s1958_s13 = scalar_lea.vmem %s1957_s23, 256 }
 0x23a   : > { %v626_v40 = vcombine.low %v596_v28, %v612_v31  ;;  %v643_v41 = vcombine.low %v592_v27, %v608_v30  ;;  %v625_v45 = vrot.slane %v618_v34, %v2273_v19  ;;  %v496_v63 = vrot.slane %v489_v55, %v2283_v25  ;;  %p1960_p13 = scmp.lt.s32.totalorder %s1958_s13, %s1952_s6 }
 0x23b   : > { %v651_v43 = vcombine.low %v600_v35, %v616_v37  ;;  %v501_v13 = vshrl.u32 %v471_v3, 16  ;;  %v472_v20 = vcombine.high %v471_v3, %v2040_v36  ;;  %vm1036_vm3 = vcmp.gt.f32.partialorder %v1035_v26, 0.5 }
 0x23c   : > { %v633_v46 = vrot.slane %v626_v40, %v2273_v19  ;;  %v650_v47 = vrot.slane %v643_v41, %v2273_v19  ;;  %v502_v7 = vshrl.u32 %v496_v63, 16  ;;  %v500_v12 = vpack.i.b16 %v496_v63, %v471_v3  ;;  %p1961_p5 = por %p1960_p13, %p1959_p9 }
 0x23d   : > { %v658_v32 = vrot.slane %v651_v43, %v2273_v19  ;;  %v497_v17 = vcombine.high %v496_v63, %v2040_v36  ;;  %v507_v23 = vshrl.u32 %v472_v20, 16 }
 0x23e   : > { %v634_v48 = vcombine.low %v625_v45, %v633_v46  ;;  %v503_v16 = vpack.i.b16 %v502_v7, %v501_v13  ;;  %p1962_p1 = pnand %p1961_p5, %p1955_p7 }
 0x23f   : > { %v659_v50 = vcombine.low %v650_v47, %v658_v32  ;;  %v508_v21 = vshrl.u32 %v497_v17, 16  ;;  %v506_v22 = vpack.i.b16 %v497_v17, %v472_v20 }
 0x240   : > { %v641_v52 = vrot.slane %v634_v48, %v2283_v25 }
 0x241   : > { %v666_v54 = vrot.slane %v659_v50, %v2283_v25  ;;  %v509_v24 = vpack.i.b16 %v508_v21, %v507_v23 }
 0x242   : > { %v671_v58 = vshrl.u32 %v641_v52, 16  ;;  %v642_v1 = vcombine.high %v641_v52, %v2040_v36 }
 0x243   : > { %v670_v57 = vpack.i.b16 %v666_v54, %v641_v52  ;;  %v672_v59 = vshrl.u32 %v666_v54, 16  ;;  %v667_v60 = vcombine.high %v666_v54, %v2040_v36 }
 0x244   : > { %v677_v8 = vshrl.u32 %v642_v1, 16 }
 0x245   : > { %v855_v61 = vsel %vm850_vm2, %v670_v57, 0  ;;  %v673_v62 = vpack.i.b16 %v672_v59, %v671_v58  ;;  %v678_v4 = vshrl.u32 %v667_v60, 16  ;;  %v676_v6 = vpack.i.b16 %v667_v60, %v642_v1 }
 0x246   : > { %1682 = vmatpush3.bf16.xpose.msra.mxu1 %v855_v61 }
 0x247   : > { %v901_v2 = vsel %vm850_vm2, %v673_v62, 0  ;;  %1693 = vmatprep.subr.bf16.mxu1 %v2032_v0  ;;  %v679_v14 = vpack.i.b16 %v678_v4, %v677_v8  ;;  %v947_v15 = vsel %vm850_vm2, %v676_v6, 0 }
 0x248   : > { %1688 = vmatpush3.bf16.xpose.msra.mxu0 %v901_v2 }
 0x249   : > { %1699 = vmatprep.subr.bf16.mxu0 %v2032_v0  ;;  %v993_v18 = vsel %vm850_vm2, %v679_v14, 0 }
 0x24d   : > { %1684 = vmatmul.mubr.msk.bf16.vlgmr.msra.gmra.mxu1 %vm850_vm2, %v500_v12 }
 0x24e   : > { %1694 = vmatpush3.bf16.xpose.msra.mxu1 %v947_v15  ;;  %1695 = vmatprep.mubr.msk.bf16.mxu1 %vm2033_vm0, %v2032_v0 }
 0x24f   : > { %1690 = vmatmul.mubr.msk.bf16.vlgmr.msra.gmra.mxu0 %vm850_vm2, %v503_v16  ;;  %1705 = vmatprep.subr.bf16.mxu1 %v2032_v0 }
 0x250   : > { %1700 = vmatpush3.bf16.xpose.msra.mxu0 %v993_v18  ;;  %1701 = vmatprep.mubr.msk.bf16.mxu0 %vm2033_vm0, %v2032_v0 }
 0x251   : > { %1711 = vmatprep.subr.bf16.mxu0 %v2032_v0 }
 0x255   : > { %1696 = vmatmul.mubr.msk.bf16.vlgmr.msra.gmra.mxu1 %vm850_vm2, %v506_v22 }
 0x256   : > { %1707 = vmatprep.mubr.msk.bf16.mxu1 %vm2033_vm0, %v2032_v0 }
 0x257   : > { %1702 = vmatmul.mubr.msk.bf16.vlgmr.msra.gmra.mxu0 %vm850_vm2, %v509_v24 }
 0x258   : > { %1713 = vmatprep.mubr.msk.bf16.mxu0 %vm2033_vm0, %v2032_v0 }
 0x30d   : > { %v891_v27 = vpop.f32.mrf.mxu1 }
 0x30e   : > { %v1039_v28 = vsel %vm1036_vm3, %v891_v27, -3.4028235e+38 }
 0x30f   : > { %v1685_v29 = vpop.f32.mrf.mxu1  ;;  %v937_v30 = vpop.f32.mrf.mxu0  ;;  %v1043_v31 = vsel %vm850_vm2, %v1039_v28, -inf }
 0x310   : > { %v1040_v34 = vsel %vm1036_vm3, %v937_v30, -3.4028235e+38  ;;  %1044 = vmax.xlane.f32.xlu1 %v1043_v31 }
 0x311   : > { %v894_v35 = vpop.f32.mrf.mxu1  ;;  %v1691_v37 = vpop.f32.mrf.mxu0  ;;  %v1046_v38 = vsel %vm850_vm2, %v1040_v34, -inf }
 0x312   : > { %1047 = vmax.xlane.f32.xlu0 %v1046_v38 }
 0x313   : > { %v1686_v39 = vpop.f32.mrf.mxu1  ;;  %v940_v40 = vpop.f32.mrf.mxu0 }
 0x315   : > { %v1692_v41 = vpop.f32.mrf.mxu0  ;;  %v983_v42 = vpop.f32.mrf.mxu1 }
 0x316   : > { %v1041_v43 = vsel %vm1036_vm3, %v983_v42, -3.4028235e+38 }
 0x317   : > { %v1697_v44 = vpop.f32.mrf.mxu1  ;;  %v1029_v45 = vpop.f32.mrf.mxu0  ;;  %v1049_v46 = vsel %vm850_vm2, %v1041_v43, -inf }
 0x318   : > { %v1042_v47 = vsel %vm1036_vm3, %v1029_v45, -3.4028235e+38  ;;  %1050 = vmax.xlane.f32.xlu0 %v1049_v46 }
 0x319   : > { %v986_v32 = vpop.f32.mrf.mxu1  ;;  %v1703_v33 = vpop.f32.mrf.mxu0  ;;  %v1052_v48 = vsel %vm850_vm2, %v1042_v47, -inf }
 0x31a   : > { %1053 = vmax.xlane.f32.xlu1 %v1052_v48 }
 0x31b   : > { %v1698_v49 = vpop.f32.mrf.mxu1  ;;  %v1032_v50 = vpop.f32.mrf.mxu0 }
 0x31d   : > { %v1704_v51 = vpop.f32.mrf.mxu0 }
 0x32b   : > { %682 = vrot.lane.b32.xlu1 %v2264_v9, %s2041_s30 }
 0x32e   : > { %680 = vrot.lane.b32.xlu0 %v2258_v5, %s2041_s30 }
 0x399   : > { %v1045_v52 = vpop.xlane.xlu1 %1044 }
 0x39a   : > { %v1055_v53 = vsub.f32 %v1039_v28, %v1045_v52 }
 0x39b   : > { %v1048_v54 = vpop.xlane.xlu0 %1047 }
 0x39c   : > { %v1059_v55 = vmul.f32 1.442695, %v1055_v53  ;;  %v1056_v56 = vsub.f32 %v1040_v34, %v1048_v54 }
 0x39e   : > { %1828 = vpow2.f32 %v1059_v55  ;;  %v1061_v57 = vmul.f32 1.442695, %v1056_v56 }
 0x3a0   : > { %1830 = vpow2.f32 %v1061_v57 }
 0x3a1   : > { %v1051_v61 = vpop.xlane.xlu0 %1050 }
 0x3a2   : > { %v1057_v63 = vsub.f32 %v1041_v43, %v1051_v61 }
 0x3a3   : > { %v1054_v5 = vpop.xlane.xlu1 %1053 }
 0x3a4   : > { %v1058_v62 = vsub.f32 %v1042_v47, %v1054_v5  ;;  %v1063_v2 = vmul.f32 1.442695, %v1057_v63 }
 0x3a6   : > { %v1065_v1 = vmul.f32 1.442695, %v1058_v62 }
 0x3a7   : > { %v683_v7 = vpop.permute.xlu1 %682 }
 0x3a8   : > { %1832 = vpow2.f32 %v1065_v1  ;;  %v729_v14 = vrot.slane %v683_v7, %v2273_v19 }
 0x3a9   : > { %1834 = vpow2.f32 %v1063_v2 }
 0x3ab   : > { %v2372_v58 = vpop.eup %1828 }
 0x3ac   : > { %v1067_v59 = vsel %vm850_vm2, %v2372_v58, 0.0 }
 0x3ad   : > { %v2376_v60 = vpop.eup %1830  ;;  %1068 = vadd.xlane.f32.xlu0 %v1067_v59 }
 0x3ae   : > { %v1070_v9 = vsel %vm850_vm2, %v2376_v60, 0.0 }
 0x3af   : > { %1071 = vadd.xlane.f32.xlu1 %v1070_v9 }
 0x3b5   : > { %v2382_v3 = vpop.eup %1832 }
 0x3b6   : > { %v2384_v4 = vpop.eup %1834  ;;  %v1076_v6 = vsel %vm850_vm2, %v2382_v3, 0.0 }
 0x3c0   : > { %684 = vrot.lane.b32.xlu1 %v2269_v11, %s2041_s30  ;;  %v1073_v11 = vsel %vm850_vm2, %v2384_v4, 0.0 }
 0x3c3   : > { %686 = vrot.lane.b32.xlu0 %v2267_v10, %s2041_s30  ;;  %v681_v10 = vpop.permute.xlu0 %680 }
 0x3c4   : > { %v695_v17 = vrot.slane %v681_v10, %v2273_v19 }
 0x3e2   : > { %1077 = vadd.xlane.f32.xlu0 %v1076_v6 }
 0x3e4   : > { %1074 = vadd.xlane.f32.xlu1 %v1073_v11 }
 0x436   : > { %v1069_v8 = vpop.xlane.xlu0 %1068 }
 0x437   : > { %1836 = vrcp.f32 %v1069_v8 }
 0x438   : > { %v1072_v12 = vpop.xlane.xlu1 %1071 }
 0x439   : > { %1838 = vrcp.f32 %v1072_v12 }
 0x43a   : > { %v687_v13 = vpop.permute.xlu0 %686 }
 0x43b   : > { %v737_v15 = vrot.slane %v687_v13, %v2273_v19 }
 0x43c   : > { %v685_v16 = vpop.permute.xlu1 %684 }
 0x43d   : > { %v738_v18 = vcombine.low %v729_v14, %v737_v15  ;;  %v739_v20 = vcombine.high %v729_v14, %v737_v15  ;;  %v703_v21 = vrot.slane %v685_v16, %v2273_v19 }
 0x43f   : > { %v746_v22 = vrot.slane %v738_v18, %v2283_v25  ;;  %v753_v23 = vrot.slane %v739_v20, %v2283_v25  ;;  %v704_v24 = vcombine.low %v695_v17, %v703_v21  ;;  %v705_v26 = vcombine.high %v695_v17, %v703_v21 }
 0x441   : > { %v754_v27 = vcombine.high %v746_v22, %v2040_v36  ;;  %v712_v28 = vrot.slane %v704_v24, %v2283_v25  ;;  %v719_v29 = vrot.slane %v705_v26, %v2283_v25  ;;  %v755_v30 = vcombine.high %v753_v23, %v2040_v36 }
 0x442   : > { %v761_v31 = vshrl.u32 %v746_v22, 16  ;;  %v777_v40 = vshrl.u32 %v753_v23, 16 }
 0x443   : > { %v720_v34 = vcombine.high %v712_v28, %v2040_v36  ;;  %v721_v35 = vcombine.high %v719_v29, %v2040_v36  ;;  %v758_v37 = vpack.i.b16 %v746_v22, %v712_v28  ;;  %v760_v38 = vshrl.u32 %v712_v28, 16 }
 0x444   : > { %v769_v39 = vshrl.u32 %v754_v27, 16  ;;  %v774_v41 = vpack.i.b16 %v753_v23, %v719_v29  ;;  %v776_v42 = vshrl.u32 %v719_v29, 16  ;;  %v785_v47 = vshrl.u32 %v755_v30, 16  ;;  %v1837_v5 = vpop.eup %1836 }
 0x445   : > { %v762_v43 = vpack.i.b16 %v761_v31, %v760_v38  ;;  %v766_v44 = vpack.i.b16 %v754_v27, %v720_v34  ;;  %v768_v45 = vshrl.u32 %v720_v34, 16  ;;  %v782_v46 = vpack.i.b16 %v755_v30, %v721_v35 }
 0x446   : > { %v778_v32 = vpack.i.b16 %v777_v40, %v776_v42  ;;  %v784_v33 = vshrl.u32 %v721_v35, 16  ;;  %v788_v48 = vcombine.low %v758_v37, %v774_v41  ;;  %v1839_v62 = vpop.eup %1838  ;;  %v1083_v2 = vmul.f32 %v1837_v5, %v2372_v58 }
 0x447   : > { %v770_v49 = vpack.i.b16 %v769_v39, %v768_v45  ;;  %v796_v50 = vcombine.low %v766_v44, %v782_v46  ;;  %v1084_v8 = vmul.f32 %v1839_v62, %v2376_v60 }
 0x448   : > { %v786_v51 = vpack.i.b16 %v785_v47, %v784_v33  ;;  %v813_v52 = vcombine.low %v762_v43, %v778_v32  ;;  %v795_v53 = vrot.slane %v788_v48, %v2273_v19  ;;  %v1087_v18 = vpack.c.bf16 %v1083_v2, %v1083_v2 }
 0x449   : > { %v803_v54 = vrot.slane %v796_v50, %v2273_v19  ;;  %v1088_v20 = vpack.c.bf16 %v1084_v8, %v1084_v8 }
 0x44a   : > { %v821_v55 = vcombine.low %v770_v49, %v786_v51  ;;  %v820_v57 = vrot.slane %v813_v52, %v2273_v19 }
 0x44b   : > { %v804_v56 = vcombine.low %v795_v53, %v803_v54 }
 0x44c   : > { %v828_v59 = vrot.slane %v821_v55, %v2273_v19 }
 0x44d   : > { %v811_v9 = vrot.slane %v804_v56, %v2283_v25 }
 0x44e   : > { %v829_v61 = vcombine.low %v820_v57, %v828_v59  ;;  %v1826_v57 = vld [vmem:[#allocation7 + $0x8] sm:$0xff]  }
 0x44f   : > { %v812_v63 = vcombine.high %v811_v9, %v2040_v36  ;;  %v841_v11 = vshrl.u32 %v811_v9, 16 }
 0x450   : > { %v836_v1 = vrot.slane %v829_v61, %v2283_v25 }
 0x451   : > { %v847_v12 = vshrl.u32 %v812_v63, 16 }
 0x452   : > { %v840_v6 = vpack.i.b16 %v836_v1, %v811_v9  ;;  %v842_v10 = vshrl.u32 %v836_v1, 16  ;;  %v837_v7 = vcombine.high %v836_v1, %v2040_v36 }
 0x454   : > { %v1096_v13 = vsel %vm1094_vm4, %v840_v6, 0  ;;  %v843_v14 = vpack.i.b16 %v842_v10, %v841_v11  ;;  %v846_v15 = vpack.i.b16 %v837_v7, %v812_v63  ;;  %v848_v16 = vshrl.u32 %v837_v7, 16  ;;  %v1827_v6 = vld [vmem:[#allocation7] sm:$0xff]  }
 0x455   : > { %1706 = vmatpush3.bf16.msra.mxu1 %v1096_v13 }
 0x456   : > { %v1142_v17 = vsel %vm1094_vm4, %v843_v14, 0  ;;  %1717 = vmatprep.subr.bf16.mxu1 %v2032_v0  ;;  %v849_v58 = vpack.i.b16 %v848_v16, %v847_v12  ;;  %v1188_v36 = vsel %vm1094_vm4, %v846_v15, 0 }
 0x457   : > { %1712 = vmatpush3.bf16.msra.mxu0 %v1142_v17 }
 0x458   : > { %1708 = vmatmul.mubr.msk.bf16.vlgmr.msra.gmra.mxu1 %vm850_vm2, %v1087_v18  ;;  %1723 = vmatprep.subr.bf16.mxu0 %v2032_v0  ;;  %v1234_v60 = vsel %vm1094_vm4, %v849_v58, 0 }
 0x459   : > { %1718 = vmatpush3.bf16.msra.mxu1 %v1188_v36  ;;  %1719 = vmatprep.mubr.msk.bf16.mxu1 %vm2033_vm0, %v2032_v0 }
 0x45a   : > { %1714 = vmatmul.mubr.msk.bf16.vlgmr.msra.gmra.mxu0 %vm850_vm2, %v1088_v20  ;;  %1729 = vmatprep.subr.bf16.mxu1 %v2032_v0 }
 0x45b   : > { %1724 = vmatpush3.bf16.msra.mxu0 %v1234_v60  ;;  %1725 = vmatprep.mubr.msk.bf16.mxu0 %vm2033_vm0, %v2032_v0 }
 0x46b   : > { %v1078_v21 = vpop.xlane.xlu0 %1077 }
 0x46c   : > { %1840 = vrcp.f32 %v1078_v21 }
 0x46d   : > { %v1075_v22 = vpop.xlane.xlu1 %1074 }
 0x46e   : > { %1842 = vrcp.f32 %v1075_v22 }
 0x479   : > { %v1841_v23 = vpop.eup %1840 }
 0x47a   : > { %v1086_v24 = vmul.f32 %v1841_v23, %v2382_v3 }
 0x47b   : > { %v1843_v26 = vpop.eup %1842 }
 0x47c   : > { %v1090_v27 = vpack.c.bf16 %v1086_v24, %v1086_v24  ;;  %v1085_v28 = vmul.f32 %v1843_v26, %v2384_v4 }
 0x47e   : > { %1726 = vmatmul.mubr.msk.bf16.vlgmr.msra.gmra.mxu0 %vm850_vm2, %v1090_v27  ;;  %v1089_v29 = vpack.c.bf16 %v1085_v28, %v1085_v28 }
 0x480   : > { %1720 = vmatmul.mubr.msk.bf16.vlgmr.msra.gmra.mxu1 %vm850_vm2, %v1089_v29 }
 0x481   : > { %1733 = vmatprep.mubr.msk.bf16.mxu1 %vm2033_vm0, %v2032_v0  ;;  %1730 = vmatpush3.bf16.msra.mxu1 %v1826_v57 }
 0x482   : > { %1731 = vmatprep.subr.bf16.mxu1 %v2032_v0 }
 0x485   : > { %1732 = vmatpush3.bf16.msra.mxu1 %v1827_v6 }
 0x518   : > { %v1132_v30 = vpop.f32.mrf.mxu1 }
 0x51a   : > { %v1709_v31 = vpop.f32.mrf.mxu1  ;;  %v1178_v34 = vpop.f32.mrf.mxu0 }
 0x51c   : > { %v1135_v35 = vpop.f32.mrf.mxu1  ;;  %v1715_v37 = vpop.f32.mrf.mxu0 }
 0x51e   : > { %v1710_v38 = vpop.f32.mrf.mxu1  ;;  %v1181_v39 = vpop.f32.mrf.mxu0 }
 0x520   : > { %v1716_v3 = vpop.f32.mrf.mxu0 }
 0x53e   : > { %v1270_v40 = vpop.f32.mrf.mxu0 }
 0x53f   : > { %v1292_v41 = vcombine.low %v1178_v34, %v1270_v40  ;;  %v1293_v42 = vcombine.high %v1178_v34, %v1270_v40 }
 0x540   : > { %v1224_v4 = vpop.f32.mrf.mxu1  ;;  %v1727_v43 = vpop.f32.mrf.mxu0 }
 0x541   : > { %v1276_v44 = vcombine.low %v1132_v30, %v1224_v4  ;;  %v1277_v45 = vcombine.high %v1132_v30, %v1224_v4  ;;  %v1300_v32 = vrot.slane %v1292_v41, %v2273_v19  ;;  %v1307_v33 = vrot.slane %v1293_v42, %v2273_v19 }
 0x542   : > { %v1721_v46 = vpop.f32.mrf.mxu1  ;;  %v1273_v47 = vpop.f32.mrf.mxu0 }
 0x543   : > { %v1284_v48 = vrot.slane %v1276_v44, %v2273_v19  ;;  %v1291_v49 = vrot.slane %v1277_v45, %v2273_v19 }
 0x544   : > { %v1227_v50 = vpop.f32.mrf.mxu1  ;;  %v1728_v51 = vpop.f32.mrf.mxu0 }
 0x545   : > { %v1308_v52 = vcombine.low %v1284_v48, %v1300_v32  ;;  %v1309_v53 = vcombine.high %v1284_v48, %v1300_v32  ;;  %v1324_v54 = vcombine.low %v1291_v49, %v1307_v33  ;;  %v1325_v55 = vcombine.high %v1291_v49, %v1307_v33 }
 0x546   : > { %v1722_v56 = vpop.f32.mrf.mxu1 }
 0x547   : > { %v1316_v59 = vrot.slane %v1308_v52, %v2283_v25  ;;  %v1323_v9 = vrot.slane %v1309_v53, %v2283_v25  ;;  %v1332_v5 = vrot.slane %v1324_v54, %v2283_v25  ;;  %v1339_v61 = vrot.slane %v1325_v55, %v2283_v25 }
 0x549   : > { %v1344_v62 = vcombine.low %v1316_v59, %v1323_v9  ;;  %v1642_v63 = vcombine.high %v1316_v59, %v1323_v9  ;;  %v1360_v1 = vcombine.low %v1332_v5, %v1339_v61  ;;  %v1643_v2 = vcombine.high %v1332_v5, %v1339_v61 }
 0x54b   : > { %v1351_v11 = vrot.slane %v1344_v62, %v2273_v19  ;;  %v1359_v10 = vrot.slane %v1642_v63, %v2273_v19  ;;  %v1367_v7 = vrot.slane %v1360_v1, %v2273_v19  ;;  %v1375_v8 = vrot.slane %v1643_v2, %v2273_v19 }
 0x54d   : > { %v1377_v12 = vcombine.high %v1351_v11, %v1359_v10  ;;  %v1393_v13 = vcombine.high %v1367_v7, %v1375_v8  ;;  %v1376_v14 = vcombine.low %v1351_v11, %v1359_v10  ;;  %v1392_v15 = vcombine.low %v1367_v7, %v1375_v8 }
 0x54f   : > { %v1391_v16 = vrot.slane %v1377_v12, %v2283_v25  ;;  %v1407_v17 = vrot.slane %v1393_v13, %v2283_v25  ;;  %v1384_v0 = vrot.slane %v1376_v14, %v2283_v25  ;;  %v1400_v18 = vrot.slane %v1392_v15, %v2283_v25 }
 0x551   : > { %v1410_v58 = vcombine.low %v1391_v16, %v1407_v17  ;;  %v1409_v36 = vcombine.high %v1384_v0, %v1400_v18  ;;  %v1408_v20 = vcombine.low %v1384_v0, %v1400_v18  ;;  %v1411_v19 = vcombine.high %v1391_v16, %v1407_v17 }
 0x553   : > { %1417 = vrot.lane.b32.xlu1 %v1410_v58, %s2042_s10  ;;  %1413 = vrot.lane.b32.xlu0 %v1409_v36, %s2043_s29 }
 0x557   : > { %1421 = vrot.lane.b32.xlu1 %v1411_v19, %s2044_s5 }
 0x5c5   : > { %v1418_v60 = vpop.permute.xlu1 %1417  ;;  %v1414_v21 = vpop.permute.xlu0 %1413 }
 0x5c6   : > { %v1424_v22 = vsel %vm850_vm2, %v1408_v20, %v1414_v21 }
 0x5c7   : > { %v1426_v23 = vsel %vm1425_vm5, %v1424_v22, %v1418_v60 }
 0x5c9   : > { %v1422_v25 = vpop.permute.xlu1 %1421 }
 0x5ca   : > { %v1428_v24 = vsel %vm1427_vm6, %v1426_v23, %v1422_v25 }
 0x5cb   : > { %v1429_v26 = vpack.c.bf16 %v1428_v24, %v1428_v24 }
 0x5cd   : > { %1734 = vmatmul.mubr.msk.bf16.vlgmr.msra.gmra.mxu1 %vm297_vm1, %v1429_v26 }
 0x68d   : > { %v1483_v27 = vpop.f32.mrf.mxu1 }
 0x68e   : > { %1489 = vst.msk [vmem:[%s278_s24] sm:$0xff] %vm297_vm1, %v1483_v27 }
 0x68f   : > { %v1735_v28 = vpop.f32.mrf.mxu1 }
 0x690   : > { %1965 = shalt.err (!%p1962_p1)
}
 0x691   : > { %s1966_s21 = scalar_lea.hbm %s2456_s12, 128  ;;  %s1970_s28 = scalar_lea.hbm %s2504_s4, 256 }
 0x692   : > { %p1967_p4 = scmp.ne.s32.totalorder %s2456_s12, %s1966_s21  ;;  %p1971_p0 = scmp.lt.s32.totalorder %s2456_s12, %s2504_s4 }
 0x693   : > { %p1972_p8 = scmp.lt.s32.totalorder %s1970_s28, %s1966_s21 }
 0x694   : > { %p1968_p3 = pnand %p1967_p4, %p2524_p6 }
 0x695   : > { %p1973_p11 = por %p1972_p8, %p1971_p0 }
 0x696   : > { %p1969_p10 = pneg %p1968_p3 }
 0x698   : > { %p1974_p2 = pnand %p1973_p11, %p1969_p10 }
 0x69a   : > { %1977 = shalt.err (!%p1974_p2)
}
 0x69b   : > { %1749 = dma.vmem_to_hbm [thread:$0]  (%p2524_p6), %s2458_s8, 128, %s2456_s12, %s1491_s25   ;;  %v1486_v29 = vpop.f32.mrf.mxu1 }
 0x69d   : > { %v1736_v30 = vpop.f32.mrf.mxu1 }
 0x69e PF: > { %s1516_s10 = sand.u32 1, %s2012_s15   ;;  %p2525_p12 = scmp.ne.s32.totalorder %s2512_s22, 0 }
 0x69f   : > { %p2526_p7 = scmp.ge.s32.totalorder %s2024_s18, 2  ;;  %s1517_s29 = scalar_lea.sflag [#allocation4], %s1516_s10 }
 0x6a1   : > { %p1766_p9 = pnand %p2526_p7, %p2525_p12 }
 0x6a3   : > { %p1767_p13 = pneg %p1766_p9 }
 0x6a5   : > { %2007 = dma.done.wait (%p1767_p13), %s1517_s29, 128  }
 0x6a6   : > { %2009 = vsyncadd (%p1767_p13), %s1517_s29, 4294967168  ;;  %p21_p6 = scmp.ge.s32.totalorder %s2143_s11, 4   ;;  %s2527_s15 = smov %s2016_s16 }
 0x6a7   : > { %s2528_s16 = smov %s2020_s17  ;;  %s2529_s17 = smov %s2159_s20 }
 0x6a8   : > { %s2530_s18 = smov %s2143_s11  ;;  %23 = sbr.rel (!%p21_p6) target bundleno = 11 (0xb), region = 102 }
 0x6ad   :  { %1522 = vsyncpa [#allocation3], 1 }
 0x6ae   :  { %1524 = vsyncpa [#allocation3 + $0x1], 1 }
 0x6af   :  { %1525 = vsyncpa [#allocation6], 1 }
 0x6b0   :  { %1526 = vsyncpa [#allocation9], 1 }
 0x6b1   :  { %1528 = vsyncpa [#allocation9 + $0x1], 1 }
 0x6b2   :  { %1529 = vsyncpa [#allocation4], 1 }
 0x6b3   :  { %1531 = vsyncpa [#allocation4 + $0x1], 1 }

</bundles_post_ra>
